<compile_context>
chip_gen: v5e
topology: v5e:2x2
jax: 0.10.0
libtpu: 0.0.40
codegen_flags: <defaults>
</compile_context>

<pallas_src>
import jax
import jax.numpy as jnp
from jax import lax
from jax.experimental import pallas as pl
from jax.experimental.pallas import tpu as pltpu

_SUBLANE = 8
_TARGET_BLOCK_BYTES = 6 << 20          # ~6 MiB streamed per grid step


def _round_up(v, m):
    return (v + m - 1) // m * m


def _vmem_limit_bytes():
    """Per-generation VMEM limit (v7x: 64 MiB physical, v5e/v6e: 128 MiB)."""
    cap = 64 * 1024 * 1024
    try:
        info = pltpu.get_tpu_info()
        cap = int(getattr(info, "vmem_capacity_bytes", cap))
    except Exception:
        pass
    return max(32 * 1024 * 1024, min(cap * 3 // 4, 100 * 1024 * 1024))


def _pick_block_batch(n, per_batch_vmem, per_batch_stream, vmem_budget,
                      target=_TARGET_BLOCK_BYTES):
    cap = min(max(1, target // max(int(per_batch_stream), 1)),
              max(1, vmem_budget // max(int(per_batch_vmem), 1)))
    bn = int(min(n, cap))
    while n % bn:          # largest divisor of n under the cap
        bn -= 1
    return bn


def _hswish(v):
    return v * jnp.clip(v + 3.0, 0.0, 6.0) * (1.0 / 6.0)


def _relu(v):
    return jnp.maximum(v, 0.0)


# ----------------------------------------------------------------------------
# Fused block: dwconv+BN1+act -> pool -> SE -> scale -> 1x1 conv+BN2 -> (+res)
# ----------------------------------------------------------------------------
def mobilenet_v3_basic_block(x, params, *, kernel_size, stride, use_hs=True):
    (w_dw, bn1_scale, bn1_shift, w1, b1, w2, b2,
     w_pw, bn2_scale, bn2_shift) = params
    N, C, H, W = x.shape
    Cout = w_pw.shape[0]
    Cr = w1.shape[0]
    k = kernel_size
    assert k % 2 == 1, "odd depthwise kernels only (MobileNetV3 uses 3/5)"
    p = (k - 1) // 2
    kk = k * k
    HW = H * W                         # lane axis (multiple of 128 in the demo;
                                       # tail stores are masked otherwise)
    use_res = (stride == 1 and C == Cout)
    act = _hswish if use_hs else _relu

    # ---- tiny weight-side precompute (runs on weights only, not activations)
    hh = jnp.arange(H)
    ww = jnp.arange(W)
    offs = []
    masks = []
    for i in range(k):
        for j in range(k):
            di, dj = i - p, j - p
            offs.append(di * W + dj)
            m = (((hh + di >= 0) & (hh + di < H))[:, None]
                 & ((ww + dj >= 0) & (ww + dj < W))[None, :])
            masks.append(m.reshape(1, HW))
    mask = jnp.concatenate(masks, axis=0).astype(jnp.float32)        # (kk, HW)
    taps = (w_dw.reshape(C, kk).astype(jnp.float32)
            * bn1_scale.reshape(C, 1).astype(jnp.float32))           # (C, kk)
    # per-tap (BN1-scaled, boundary-masked) weights, lane-broadcast
    wm = taps.T[:, :, None] * mask[:, None, :]                       # (kk, C, HW)
    sh1 = bn1_shift.reshape(C, 1).astype(jnp.float32)

    Crp = _round_up(Cr, _SUBLANE)      # zero-padded SE rows/cols: exact
    w1p = jnp.zeros((Crp, C), jnp.float32).at[:Cr, :].set(w1.astype(jnp.float32))
    b1p = jnp.zeros((Crp, 1), jnp.float32).at[:Cr, :].set(
        b1.reshape(Cr, 1).astype(jnp.float32))
    w2p = jnp.zeros((C, Crp), jnp.float32).at[:, :Cr].set(w2.astype(jnp.float32))
    b2c = b2.reshape(C, 1).astype(jnp.float32)
    wpw = w_pw.astype(jnp.float32)
    s2c = bn2_scale.reshape(Cout, 1).astype(jnp.float32)
    t2c = bn2_shift.reshape(Cout, 1).astype(jnp.float32)

    if stride > 1:
        # TODO(synk): compute only the strided output rows/cols in-kernel
        # instead of computing the stride-1 result and subsampling after.
        selm = (((hh % stride) == 0)[:, None] & ((ww % stride) == 0)[None, :])
        sel = selm.reshape(1, HW).astype(jnp.float32)
        Ho = (H + 2 * p - k) // stride + 1
        Wo = (W + 2 * p - k) // stride + 1
    else:
        sel = None
        Ho, Wo = H, W
    inv_cnt = 1.0 / float(Ho * Wo)

    # ---- block-batch choice under the per-generation VMEM budget ----
    isz = x.dtype.itemsize
    vmem_limit = _vmem_limit_bytes()
    const_bytes = 2 * wm.size * 4 + (1 << 16)          # constants (x2 buffers)
    per_b_vmem = (2 * C * HW * isz        # input block, double-buffered
                  + 2 * Cout * HW * isz   # output block, double-buffered
                  + C * HW * 4            # f32 y scratch
                  + C * 4)                # pooled column
    per_b_stream = (C + Cout) * HW * isz
    budget = max(per_b_vmem, int(vmem_limit * 0.6) - const_bytes)
    bn = _pick_block_batch(N, per_b_vmem, per_b_stream, budget)
    has_sel = sel is not None

    def kernel(*refs):
        if has_sel:
            (x_ref, wm_ref, sh1_ref, w1_ref, b1_ref, w2_ref, b2_ref,
             wpw_ref, s2_ref, t2_ref, sel_ref, o_ref, y_scr, p_scr) = refs
        else:
            (x_ref, wm_ref, sh1_ref, w1_ref, b1_ref, w2_ref, b2_ref,
             wpw_ref, s2_ref, t2_ref, o_ref, y_scr, p_scr) = refs
            sel_ref = None

        sh1v = sh1_ref[...]                               # (C, 1)
        selv = sel_ref[...] if sel_ref is not None else None

        # -- pass 1: depthwise conv + folded BN1 + act; stash y, pooled cols --
        for bi in range(bn):
            xb = x_ref[bi].astype(jnp.float32)            # (C, HW)
            acc = None
            for t in range(kk):
                off = offs[t]
                shifted = xb if off == 0 else pltpu.roll(xb, (-off) % HW, axis=1)
                term = wm_ref[t] * shifted                # masked, BN1-scaled tap
                acc = term if acc is None else acc + term
            y = act(acc + sh1v)                           # (C, HW) f32
            y_scr[bi] = y
            yp = y if selv is None else y * selv          # strided-pool mask
            p_scr[:, bi:bi + 1] = jnp.sum(yp, axis=1, keepdims=True) * inv_cnt

        # -- SE excitation, batched over the block's samples (MXU) --
        h = jnp.maximum(
            jnp.dot(w1_ref[...], p_scr[...],
                    preferred_element_type=jnp.float32) + b1_ref[...], 0.0)
        sc = jax.nn.sigmoid(
            jnp.dot(w2_ref[...], h,
                    preferred_element_type=jnp.float32) + b2_ref[...])  # (C, bn)

        wpwv = wpw_ref[...]
        s2v = s2_ref[...]
        t2v = t2_ref[...]

        # -- pass 2: SE scale, 1x1 conv (MXU) + folded BN2 (+ residual) --
        for bi in range(bn):
            ysc = y_scr[bi] * sc[:, bi:bi + 1]            # (C, HW)
            z = jnp.dot(wpwv, ysc, preferred_element_type=jnp.float32)
            z = z * s2v + t2v
            if use_res:
                z = z + x_ref[bi].astype(jnp.float32)     # residual from VMEM
            o_ref[bi] = z.astype(o_ref.dtype)             # lane-dense store

    xf = x.reshape(N, C, HW)
    full2 = lambda n: (0, 0)
    full3 = lambda n: (0, 0, 0)
    in_specs = [
        pl.BlockSpec((bn, C, HW), lambda n: (n, 0, 0)),   # x (also residual)
        pl.BlockSpec((kk, C, HW), full3),                 # masked taps
        pl.BlockSpec((C, 1), full2),                      # bn1 shift
        pl.BlockSpec((Crp, C), full2),                    # SE fc1 w
        pl.BlockSpec((Crp, 1), full2),                    # SE fc1 b
        pl.BlockSpec((C, Crp), full2),                    # SE fc2 w
        pl.BlockSpec((C, 1), full2),                      # SE fc2 b
        pl.BlockSpec((Cout, C), full2),                   # 1x1 conv w
        pl.BlockSpec((Cout, 1), full2),                   # bn2 scale
        pl.BlockSpec((Cout, 1), full2),                   # bn2 shift
    ]
    args = [xf, wm, sh1, w1p, b1p, w2p, b2c, wpw, s2c, t2c]
    if has_sel:
        in_specs.append(pl.BlockSpec((1, HW), full2))
        args.append(sel)

    out = pl.pallas_call(
        kernel,
        out_shape=jax.ShapeDtypeStruct((N, Cout, HW), x.dtype),
        grid_spec=pltpu.PrefetchScalarGridSpec(
            num_scalar_prefetch=0,
            grid=(N // bn,),
            in_specs=in_specs,
            out_specs=pl.BlockSpec((bn, Cout, HW), lambda n: (n, 0, 0)),
            scratch_shapes=[pltpu.VMEM((bn, C, HW), jnp.float32),   # y
                            pltpu.VMEM((C, bn), jnp.float32)]),     # pooled
        compiler_params=pltpu.CompilerParams(
            dimension_semantics=("parallel",),
            vmem_limit_bytes=vmem_limit,
        ),
    )(*args)

    if stride == 1:
        return out.reshape(N, Cout, H, W)
    return out.reshape(N, Cout, H, W)[:, :, ::stride, ::stride]


# ----------------------------------------------------------------------------
# Pure-JAX reference (matches the PyTorch forward, inference-mode BN)
# ----------------------------------------------------------------------------
def _reference_block(x, w_dw, bn1_scale, bn1_shift, w1, b1, w2, b2,
                     w_pw, bn2_scale, bn2_shift, *, kernel_size, stride, use_hs):
    N, C, H, W = x.shape
    p = (kernel_size - 1) // 2
    act = _hswish if use_hs else _relu
    hi = lax.Precision.HIGHEST
    y = lax.conv_general_dilated(
        x, w_dw, (stride, stride), [(p, p), (p, p)],
        dimension_numbers=("NCHW", "OIHW", "NCHW"),
        feature_group_count=C, precision=hi)
    y = y * bn1_scale[None, :, None, None] + bn1_shift[None, :, None, None]
    y = act(y)
    pooled = jnp.mean(y, axis=(2, 3), keepdims=True)
    h = jnp.maximum(jnp.einsum("rc,ncij->nrij", w1, pooled, precision=hi)
                    + b1.reshape(1, -1, 1, 1), 0.0)
    s = jax.nn.sigmoid(jnp.einsum("cr,nrij->ncij", w2, h, precision=hi)
                       + b2.reshape(1, -1, 1, 1))
    y = y * s
    z = jnp.einsum("dc,nchw->ndhw", w_pw, y, precision=hi)
    z = z * bn2_scale[None, :, None, None] + bn2_shift[None, :, None, None]
    if stride == 1 and C == w_pw.shape[0]:
        z = z + x
    return z


if __name__ == "__main__":
    # MobileNetV3BasicBlock(in_channels=8, out_channels=8, kernel_size=3,
    #                       stride=1, reduction=4, use_hs=True)
    N, C_in, C_out, H, W = 2, 8, 8, 16, 16
    kernel_size, stride, reduction, use_hs = 3, 1, 4, True
    Cr = C_in // reduction

    key = jax.random.PRNGKey(0)
    ks = jax.random.split(key, 11)
    x = jax.random.normal(ks[0], (N, C_in, H, W), jnp.float32)

    # conv1 (depthwise, bias=False) + BN1 folded to scale/shift (inference)
    w_dw = jax.random.normal(ks[1], (C_in, 1, kernel_size, kernel_size),
                             jnp.float32) * 0.3
    bn1_scale = 1.0 + 0.1 * jax.random.normal(ks[2], (C_in,), jnp.float32)
    bn1_shift = 0.1 * jax.random.normal(ks[3], (C_in,), jnp.float32)
    # SE fc1 / fc2 (1x1 convs with bias)
    w1 = jax.random.normal(ks[4], (Cr, C_in), jnp.float32) * 0.5
    b1 = 0.1 * jax.random.normal(ks[5], (Cr, 1), jnp.float32)
    w2 = jax.random.normal(ks[6], (C_in, Cr), jnp.float32) * 0.5
    b2 = 0.1 * jax.random.normal(ks[7], (C_in, 1), jnp.float32)
    # conv2 (1x1, bias=False) + BN2 folded
    w_pw = jax.random.normal(ks[8], (C_out, C_in), jnp.float32) * 0.3
    bn2_scale = 1.0 + 0.1 * jax.random.normal(ks[9], (C_out,), jnp.float32)
    bn2_shift = 0.1 * jax.random.normal(ks[10], (C_out,), jnp.float32)

    params = (w_dw, bn1_scale, bn1_shift, w1, b1, w2, b2,
              w_pw, bn2_scale, bn2_shift)

    fwd = jax.jit(lambda xx, pp: mobilenet_v3_basic_block(
        xx, pp, kernel_size=kernel_size, stride=stride, use_hs=use_hs))
    out = jax.block_until_ready(fwd(x, params))

    ref = _reference_block(x, *params, kernel_size=kernel_size, stride=stride,
                           use_hs=use_hs)
    assert out.shape == ref.shape, (out.shape, ref.shape)
    err = float(jnp.max(jnp.abs(out - ref)))
    assert jnp.allclose(out, ref, atol=2e-3, rtol=2e-3), \
        f"mismatch vs reference, max abs err = {err}"

    print("KERNEL_OK")
</pallas_src>

<mosaic_0001>
module attributes {stable_mosaic.version = 11 : i64} {
  func.func @kernel(%arg0: i32, %arg1: memref<2x8x256xf32, #tpu.memory_space<vmem>>, %arg2: memref<9x8x256xf32, #tpu.memory_space<vmem>>, %arg3: memref<8x1xf32, #tpu.memory_space<vmem>>, %arg4: memref<8x8xf32, #tpu.memory_space<vmem>>, %arg5: memref<8x1xf32, #tpu.memory_space<vmem>>, %arg6: memref<8x8xf32, #tpu.memory_space<vmem>>, %arg7: memref<8x1xf32, #tpu.memory_space<vmem>>, %arg8: memref<8x8xf32, #tpu.memory_space<vmem>>, %arg9: memref<8x1xf32, #tpu.memory_space<vmem>>, %arg10: memref<8x1xf32, #tpu.memory_space<vmem>>, %arg11: memref<2x8x256xf32, #tpu.memory_space<vmem>>, %arg12: memref<2x8x256xf32, #tpu.memory_space<vmem>>, %arg13: memref<8x2xf32, #tpu.memory_space<vmem>>) attributes {dimension_semantics = [#tpu.dimension_semantics<parallel>], iteration_bounds = array<i64: 1>, scalar_prefetch = 0 : i64, scratch_operands = 2 : i64, tpu.core_type = #tpu.core_type<tc>, window_params = [{transform_indices = @transform_0, window_bounds = array<i64: 2, 8, 256>}, {pipeline_mode = #tpu.pipeline_mode<synchronous>, transform_indices = @transform_1, window_bounds = array<i64: 9, 8, 256>}, {pipeline_mode = #tpu.pipeline_mode<synchronous>, transform_indices = @transform_2, window_bounds = array<i64: 8, 1>}, {pipeline_mode = #tpu.pipeline_mode<synchronous>, transform_indices = @transform_3, window_bounds = array<i64: 8, 8>}, {pipeline_mode = #tpu.pipeline_mode<synchronous>, transform_indices = @transform_4, window_bounds = array<i64: 8, 1>}, {pipeline_mode = #tpu.pipeline_mode<synchronous>, transform_indices = @transform_5, window_bounds = array<i64: 8, 8>}, {pipeline_mode = #tpu.pipeline_mode<synchronous>, transform_indices = @transform_6, window_bounds = array<i64: 8, 1>}, {pipeline_mode = #tpu.pipeline_mode<synchronous>, transform_indices = @transform_7, window_bounds = array<i64: 8, 8>}, {pipeline_mode = #tpu.pipeline_mode<synchronous>, transform_indices = @transform_8, window_bounds = array<i64: 8, 1>}, {pipeline_mode = #tpu.pipeline_mode<synchronous>, transform_indices = @transform_9, window_bounds = array<i64: 8, 1>}, {transform_indices = @transform_10, window_bounds = array<i64: 2, 8, 256>}]} {
    %c0 = arith.constant 0 : index
    %c0_0 = arith.constant 0 : index
    %0 = vector.load %arg3[%c0, %c0_0] : memref<8x1xf32, #tpu.memory_space<vmem>>, vector<8x1xf32>
    %c0_1 = arith.constant 0 : index
    %c0_2 = arith.constant 0 : index
    %c0_3 = arith.constant 0 : index
    %1 = vector.load %arg1[%c0_1, %c0_2, %c0_3] : memref<2x8x256xf32, #tpu.memory_space<vmem>>, vector<1x8x256xf32>
    %2 = vector.shape_cast %1 : vector<1x8x256xf32> to vector<8x256xf32>
    %c17_i32 = arith.constant 17 : i32
    %3 = tpu.dynamic_rotate %2 by %c17_i32 dim 1 : vector<8x256xf32>, i32 -> vector<8x256xf32>
    %c0_4 = arith.constant 0 : index
    %c0_5 = arith.constant 0 : index
    %c0_6 = arith.constant 0 : index
    %4 = vector.load %arg2[%c0_4, %c0_5, %c0_6] : memref<9x8x256xf32, #tpu.memory_space<vmem>>, vector<1x8x256xf32>
    %5 = vector.shape_cast %4 : vector<1x8x256xf32> to vector<8x256xf32>
    %6 = arith.mulf %5, %3 : vector<8x256xf32>
    %c16_i32 = arith.constant 16 : i32
    %7 = tpu.dynamic_rotate %2 by %c16_i32 dim 1 : vector<8x256xf32>, i32 -> vector<8x256xf32>
    %c1 = arith.constant 1 : index
    %c0_7 = arith.constant 0 : index
    %c0_8 = arith.constant 0 : index
    %8 = vector.load %arg2[%c1, %c0_7, %c0_8] : memref<9x8x256xf32, #tpu.memory_space<vmem>>, vector<1x8x256xf32>
    %9 = vector.shape_cast %8 : vector<1x8x256xf32> to vector<8x256xf32>
    %10 = arith.mulf %9, %7 : vector<8x256xf32>
    %11 = arith.addf %6, %10 : vector<8x256xf32>
    %c15_i32 = arith.constant 15 : i32
    %12 = tpu.dynamic_rotate %2 by %c15_i32 dim 1 : vector<8x256xf32>, i32 -> vector<8x256xf32>
    %c2 = arith.constant 2 : index
    %c0_9 = arith.constant 0 : index
    %c0_10 = arith.constant 0 : index
    %13 = vector.load %arg2[%c2, %c0_9, %c0_10] : memref<9x8x256xf32, #tpu.memory_space<vmem>>, vector<1x8x256xf32>
    %14 = vector.shape_cast %13 : vector<1x8x256xf32> to vector<8x256xf32>
    %15 = arith.mulf %14, %12 : vector<8x256xf32>
    %16 = arith.addf %11, %15 : vector<8x256xf32>
    %c1_i32 = arith.constant 1 : i32
    %17 = tpu.dynamic_rotate %2 by %c1_i32 dim 1 : vector<8x256xf32>, i32 -> vector<8x256xf32>
    %c3 = arith.constant 3 : index
    %c0_11 = arith.constant 0 : index
    %c0_12 = arith.constant 0 : index
    %18 = vector.load %arg2[%c3, %c0_11, %c0_12] : memref<9x8x256xf32, #tpu.memory_space<vmem>>, vector<1x8x256xf32>
    %19 = vector.shape_cast %18 : vector<1x8x256xf32> to vector<8x256xf32>
    %20 = arith.mulf %19, %17 : vector<8x256xf32>
    %21 = arith.addf %16, %20 : vector<8x256xf32>
    %c4 = arith.constant 4 : index
    %c0_13 = arith.constant 0 : index
    %c0_14 = arith.constant 0 : index
    %22 = vector.load %arg2[%c4, %c0_13, %c0_14] : memref<9x8x256xf32, #tpu.memory_space<vmem>>, vector<1x8x256xf32>
    %23 = vector.shape_cast %22 : vector<1x8x256xf32> to vector<8x256xf32>
    %24 = arith.mulf %23, %2 : vector<8x256xf32>
    %25 = arith.addf %21, %24 : vector<8x256xf32>
    %c255_i32 = arith.constant 255 : i32
    %26 = tpu.dynamic_rotate %2 by %c255_i32 dim 1 : vector<8x256xf32>, i32 -> vector<8x256xf32>
    %c5 = arith.constant 5 : index
    %c0_15 = arith.constant 0 : index
    %c0_16 = arith.constant 0 : index
    %27 = vector.load %arg2[%c5, %c0_15, %c0_16] : memref<9x8x256xf32, #tpu.memory_space<vmem>>, vector<1x8x256xf32>
    %28 = vector.shape_cast %27 : vector<1x8x256xf32> to vector<8x256xf32>
    %29 = arith.mulf %28, %26 : vector<8x256xf32>
    %30 = arith.addf %25, %29 : vector<8x256xf32>
    %c241_i32 = arith.constant 241 : i32
    %31 = tpu.dynamic_rotate %2 by %c241_i32 dim 1 : vector<8x256xf32>, i32 -> vector<8x256xf32>
    %c6 = arith.constant 6 : index
    %c0_17 = arith.constant 0 : index
    %c0_18 = arith.constant 0 : index
    %32 = vector.load %arg2[%c6, %c0_17, %c0_18] : memref<9x8x256xf32, #tpu.memory_space<vmem>>, vector<1x8x256xf32>
    %33 = vector.shape_cast %32 : vector<1x8x256xf32> to vector<8x256xf32>
    %34 = arith.mulf %33, %31 : vector<8x256xf32>
    %35 = arith.addf %30, %34 : vector<8x256xf32>
    %c240_i32 = arith.constant 240 : i32
    %36 = tpu.dynamic_rotate %2 by %c240_i32 dim 1 : vector<8x256xf32>, i32 -> vector<8x256xf32>
    %c7 = arith.constant 7 : index
    %c0_19 = arith.constant 0 : index
    %c0_20 = arith.constant 0 : index
    %37 = vector.load %arg2[%c7, %c0_19, %c0_20] : memref<9x8x256xf32, #tpu.memory_space<vmem>>, vector<1x8x256xf32>
    %38 = vector.shape_cast %37 : vector<1x8x256xf32> to vector<8x256xf32>
    %39 = arith.mulf %38, %36 : vector<8x256xf32>
    %40 = arith.addf %35, %39 : vector<8x256xf32>
    %c239_i32 = arith.constant 239 : i32
    %41 = tpu.dynamic_rotate %2 by %c239_i32 dim 1 : vector<8x256xf32>, i32 -> vector<8x256xf32>
    %c8 = arith.constant 8 : index
    %c0_21 = arith.constant 0 : index
    %c0_22 = arith.constant 0 : index
    %42 = vector.load %arg2[%c8, %c0_21, %c0_22] : memref<9x8x256xf32, #tpu.memory_space<vmem>>, vector<1x8x256xf32>
    %43 = vector.shape_cast %42 : vector<1x8x256xf32> to vector<8x256xf32>
    %44 = arith.mulf %43, %41 : vector<8x256xf32>
    %45 = arith.addf %40, %44 : vector<8x256xf32>
    %46 = vector.broadcast %0 : vector<8x1xf32> to vector<8x256xf32>
    %47 = arith.addf %45, %46 : vector<8x256xf32>
    %cst = arith.constant 3.000000e+00 : f32
    %48 = vector.broadcast %cst : f32 to vector<8x256xf32>
    %49 = arith.addf %47, %48 : vector<8x256xf32>
    %cst_23 = arith.constant 0.000000e+00 : f32
    %cst_24 = arith.constant 6.000000e+00 : f32
    %50 = vector.broadcast %cst_23 : f32 to vector<8x256xf32>
    %51 = arith.maximumf %50, %49 : vector<8x256xf32>
    %52 = vector.broadcast %cst_24 : f32 to vector<8x256xf32>
    %53 = arith.minimumf %52, %51 : vector<8x256xf32>
    %54 = arith.mulf %47, %53 : vector<8x256xf32>
    %cst_25 = arith.constant 0.166666672 : f32
    %55 = vector.broadcast %cst_25 : f32 to vector<8x256xf32>
    %56 = arith.mulf %54, %55 : vector<8x256xf32>
    %c0_26 = arith.constant 0 : index
    %c0_27 = arith.constant 0 : index
    %c0_28 = arith.constant 0 : index
    %57 = vector.load %arg12[%c0_26, %c0_27, %c0_28] : memref<2x8x256xf32, #tpu.memory_space<vmem>>, vector<1x8x256xf32>
    %58 = vector.shape_cast %57 : vector<1x8x256xf32> to vector<8x256xf32>
    %59 = vector.shape_cast %56 : vector<8x256xf32> to vector<1x8x256xf32>
    tpu.vector_store %arg12[%c0_26, %c0_27, %c0_28], %59 {strides = array<i32>} : memref<2x8x256xf32, #tpu.memory_space<vmem>>, vector<1x8x256xf32>,
    %cst_29 = arith.constant dense<0.000000e+00> : vector<8xf32>
    %60 = vector.multi_reduction <add>, %56, %cst_29 [1] : vector<8x256xf32> to vector<8xf32>
    %61 = vector.shape_cast %60 : vector<8xf32> to vector<8x1xf32>
    %cst_30 = arith.constant 3.906250e-03 : f32
    %62 = vector.broadcast %cst_30 : f32 to vector<8x1xf32>
    %63 = arith.mulf %61, %62 : vector<8x1xf32>
    %c0_31 = arith.constant 0 : index
    %c0_32 = arith.constant 0 : index
    %64 = vector.load %arg13[%c0_31, %c0_32] : memref<8x2xf32, #tpu.memory_space<vmem>>, vector<8x1xf32>
    tpu.vector_store %arg13[%c0_31, %c0_32], %63 {strides = array<i32>} : memref<8x2xf32, #tpu.memory_space<vmem>>, vector<8x1xf32>,
    %c1_33 = arith.constant 1 : index
    %c0_34 = arith.constant 0 : index
    %c0_35 = arith.constant 0 : index
    %65 = vector.load %arg1[%c1_33, %c0_34, %c0_35] : memref<2x8x256xf32, #tpu.memory_space<vmem>>, vector<1x8x256xf32>
    %66 = vector.shape_cast %65 : vector<1x8x256xf32> to vector<8x256xf32>
    %c17_i32_36 = arith.constant 17 : i32
    %67 = tpu.dynamic_rotate %66 by %c17_i32_36 dim 1 : vector<8x256xf32>, i32 -> vector<8x256xf32>
    %c0_37 = arith.constant 0 : index
    %c0_38 = arith.constant 0 : index
    %c0_39 = arith.constant 0 : index
    %68 = vector.load %arg2[%c0_37, %c0_38, %c0_39] : memref<9x8x256xf32, #tpu.memory_space<vmem>>, vector<1x8x256xf32>
    %69 = vector.shape_cast %68 : vector<1x8x256xf32> to vector<8x256xf32>
    %70 = arith.mulf %69, %67 : vector<8x256xf32>
    %c16_i32_40 = arith.constant 16 : i32
    %71 = tpu.dynamic_rotate %66 by %c16_i32_40 dim 1 : vector<8x256xf32>, i32 -> vector<8x256xf32>
    %c1_41 = arith.constant 1 : index
    %c0_42 = arith.constant 0 : index
    %c0_43 = arith.constant 0 : index
    %72 = vector.load %arg2[%c1_41, %c0_42, %c0_43] : memref<9x8x256xf32, #tpu.memory_space<vmem>>, vector<1x8x256xf32>
    %73 = vector.shape_cast %72 : vector<1x8x256xf32> to vector<8x256xf32>
    %74 = arith.mulf %73, %71 : vector<8x256xf32>
    %75 = arith.addf %70, %74 : vector<8x256xf32>
    %c15_i32_44 = arith.constant 15 : i32
    %76 = tpu.dynamic_rotate %66 by %c15_i32_44 dim 1 : vector<8x256xf32>, i32 -> vector<8x256xf32>
    %c2_45 = arith.constant 2 : index
    %c0_46 = arith.constant 0 : index
    %c0_47 = arith.constant 0 : index
    %77 = vector.load %arg2[%c2_45, %c0_46, %c0_47] : memref<9x8x256xf32, #tpu.memory_space<vmem>>, vector<1x8x256xf32>
    %78 = vector.shape_cast %77 : vector<1x8x256xf32> to vector<8x256xf32>
    %79 = arith.mulf %78, %76 : vector<8x256xf32>
    %80 = arith.addf %75, %79 : vector<8x256xf32>
    %c1_i32_48 = arith.constant 1 : i32
    %81 = tpu.dynamic_rotate %66 by %c1_i32_48 dim 1 : vector<8x256xf32>, i32 -> vector<8x256xf32>
    %c3_49 = arith.constant 3 : index
    %c0_50 = arith.constant 0 : index
    %c0_51 = arith.constant 0 : index
    %82 = vector.load %arg2[%c3_49, %c0_50, %c0_51] : memref<9x8x256xf32, #tpu.memory_space<vmem>>, vector<1x8x256xf32>
    %83 = vector.shape_cast %82 : vector<1x8x256xf32> to vector<8x256xf32>
    %84 = arith.mulf %83, %81 : vector<8x256xf32>
    %85 = arith.addf %80, %84 : vector<8x256xf32>
    %c4_52 = arith.constant 4 : index
    %c0_53 = arith.constant 0 : index
    %c0_54 = arith.constant 0 : index
    %86 = vector.load %arg2[%c4_52, %c0_53, %c0_54] : memref<9x8x256xf32, #tpu.memory_space<vmem>>, vector<1x8x256xf32>
    %87 = vector.shape_cast %86 : vector<1x8x256xf32> to vector<8x256xf32>
    %88 = arith.mulf %87, %66 : vector<8x256xf32>
    %89 = arith.addf %85, %88 : vector<8x256xf32>
    %c255_i32_55 = arith.constant 255 : i32
    %90 = tpu.dynamic_rotate %66 by %c255_i32_55 dim 1 : vector<8x256xf32>, i32 -> vector<8x256xf32>
    %c5_56 = arith.constant 5 : index
    %c0_57 = arith.constant 0 : index
    %c0_58 = arith.constant 0 : index
    %91 = vector.load %arg2[%c5_56, %c0_57, %c0_58] : memref<9x8x256xf32, #tpu.memory_space<vmem>>, vector<1x8x256xf32>
    %92 = vector.shape_cast %91 : vector<1x8x256xf32> to vector<8x256xf32>
    %93 = arith.mulf %92, %90 : vector<8x256xf32>
    %94 = arith.addf %89, %93 : vector<8x256xf32>
    %c241_i32_59 = arith.constant 241 : i32
    %95 = tpu.dynamic_rotate %66 by %c241_i32_59 dim 1 : vector<8x256xf32>, i32 -> vector<8x256xf32>
    %c6_60 = arith.constant 6 : index
    %c0_61 = arith.constant 0 : index
    %c0_62 = arith.constant 0 : index
    %96 = vector.load %arg2[%c6_60, %c0_61, %c0_62] : memref<9x8x256xf32, #tpu.memory_space<vmem>>, vector<1x8x256xf32>
    %97 = vector.shape_cast %96 : vector<1x8x256xf32> to vector<8x256xf32>
    %98 = arith.mulf %97, %95 : vector<8x256xf32>
    %99 = arith.addf %94, %98 : vector<8x256xf32>
    %c240_i32_63 = arith.constant 240 : i32
    %100 = tpu.dynamic_rotate %66 by %c240_i32_63 dim 1 : vector<8x256xf32>, i32 -> vector<8x256xf32>
    %c7_64 = arith.constant 7 : index
    %c0_65 = arith.constant 0 : index
    %c0_66 = arith.constant 0 : index
    %101 = vector.load %arg2[%c7_64, %c0_65, %c0_66] : memref<9x8x256xf32, #tpu.memory_space<vmem>>, vector<1x8x256xf32>
    %102 = vector.shape_cast %101 : vector<1x8x256xf32> to vector<8x256xf32>
    %103 = arith.mulf %102, %100 : vector<8x256xf32>
    %104 = arith.addf %99, %103 : vector<8x256xf32>
    %c239_i32_67 = arith.constant 239 : i32
    %105 = tpu.dynamic_rotate %66 by %c239_i32_67 dim 1 : vector<8x256xf32>, i32 -> vector<8x256xf32>
    %c8_68 = arith.constant 8 : index
    %c0_69 = arith.constant 0 : index
    %c0_70 = arith.constant 0 : index
    %106 = vector.load %arg2[%c8_68, %c0_69, %c0_70] : memref<9x8x256xf32, #tpu.memory_space<vmem>>, vector<1x8x256xf32>
    %107 = vector.shape_cast %106 : vector<1x8x256xf32> to vector<8x256xf32>
    %108 = arith.mulf %107, %105 : vector<8x256xf32>
    %109 = arith.addf %104, %108 : vector<8x256xf32>
    %110 = vector.broadcast %0 : vector<8x1xf32> to vector<8x256xf32>
    %111 = arith.addf %109, %110 : vector<8x256xf32>
    %cst_71 = arith.constant 3.000000e+00 : f32
    %112 = vector.broadcast %cst_71 : f32 to vector<8x256xf32>
    %113 = arith.addf %111, %112 : vector<8x256xf32>
    %cst_72 = arith.constant 0.000000e+00 : f32
    %cst_73 = arith.constant 6.000000e+00 : f32
    %114 = vector.broadcast %cst_72 : f32 to vector<8x256xf32>
    %115 = arith.maximumf %114, %113 : vector<8x256xf32>
    %116 = vector.broadcast %cst_73 : f32 to vector<8x256xf32>
    %117 = arith.minimumf %116, %115 : vector<8x256xf32>
    %118 = arith.mulf %111, %117 : vector<8x256xf32>
    %cst_74 = arith.constant 0.166666672 : f32
    %119 = vector.broadcast %cst_74 : f32 to vector<8x256xf32>
    %120 = arith.mulf %118, %119 : vector<8x256xf32>
    %c1_75 = arith.constant 1 : index
    %c0_76 = arith.constant 0 : index
    %c0_77 = arith.constant 0 : index
    %121 = vector.load %arg12[%c1_75, %c0_76, %c0_77] : memref<2x8x256xf32, #tpu.memory_space<vmem>>, vector<1x8x256xf32>
    %122 = vector.shape_cast %121 : vector<1x8x256xf32> to vector<8x256xf32>
    %123 = vector.shape_cast %120 : vector<8x256xf32> to vector<1x8x256xf32>
    tpu.vector_store %arg12[%c1_75, %c0_76, %c0_77], %123 {strides = array<i32>} : memref<2x8x256xf32, #tpu.memory_space<vmem>>, vector<1x8x256xf32>,
    %cst_78 = arith.constant dense<0.000000e+00> : vector<8xf32>
    %124 = vector.multi_reduction <add>, %120, %cst_78 [1] : vector<8x256xf32> to vector<8xf32>
    %125 = vector.shape_cast %124 : vector<8xf32> to vector<8x1xf32>
    %cst_79 = arith.constant 3.906250e-03 : f32
    %126 = vector.broadcast %cst_79 : f32 to vector<8x1xf32>
    %127 = arith.mulf %125, %126 : vector<8x1xf32>
    %c0_80 = arith.constant 0 : index
    %c1_81 = arith.constant 1 : index
    %128 = vector.load %arg13[%c0_80, %c1_81] : memref<8x2xf32, #tpu.memory_space<vmem>>, vector<8x1xf32>
    tpu.vector_store %arg13[%c0_80, %c1_81], %127 {strides = array<i32>} : memref<8x2xf32, #tpu.memory_space<vmem>>, vector<8x1xf32>,
    %c0_82 = arith.constant 0 : index
    %c0_83 = arith.constant 0 : index
    %129 = vector.load %arg4[%c0_82, %c0_83] : memref<8x8xf32, #tpu.memory_space<vmem>>, vector<8x8xf32>
    %c0_84 = arith.constant 0 : index
    %c0_85 = arith.constant 0 : index
    %130 = vector.load %arg13[%c0_84, %c0_85] : memref<8x2xf32, #tpu.memory_space<vmem>>, vector<8x2xf32>
    %cst_86 = arith.constant dense<0.000000e+00> : vector<8x2xf32>
    %131 = tpu.matmul %129, %130, %cst_86 {dimension_numbers = #tpu.dot_dimension_numbers<[1], [0], [0], [1], [0, 0, 1, 1], [], []>} : vector<8x8xf32>, vector<8x2xf32>, vector<8x2xf32> -> vector<8x2xf32>
    %c0_87 = arith.constant 0 : index
    %c0_88 = arith.constant 0 : index
    %132 = vector.load %arg5[%c0_87, %c0_88] : memref<8x1xf32, #tpu.memory_space<vmem>>, vector<8x1xf32>
    %133 = vector.broadcast %132 : vector<8x1xf32> to vector<8x2xf32>
    %134 = arith.addf %131, %133 : vector<8x2xf32>
    %cst_89 = arith.constant 0.000000e+00 : f32
    %135 = vector.broadcast %cst_89 : f32 to vector<8x2xf32>
    %136 = arith.maximumf %134, %135 : vector<8x2xf32>
    %c0_90 = arith.constant 0 : index
    %c0_91 = arith.constant 0 : index
    %137 = vector.load %arg6[%c0_90, %c0_91] : memref<8x8xf32, #tpu.memory_space<vmem>>, vector<8x8xf32>
    %cst_92 = arith.constant dense<0.000000e+00> : vector<8x2xf32>
    %138 = tpu.matmul %137, %136, %cst_92 {dimension_numbers = #tpu.dot_dimension_numbers<[1], [0], [0], [1], [0, 0, 1, 1], [], []>} : vector<8x8xf32>, vector<8x2xf32>, vector<8x2xf32> -> vector<8x2xf32>
    %c0_93 = arith.constant 0 : index
    %c0_94 = arith.constant 0 : index
    %139 = vector.load %arg7[%c0_93, %c0_94] : memref<8x1xf32, #tpu.memory_space<vmem>>, vector<8x1xf32>
    %140 = vector.broadcast %139 : vector<8x1xf32> to vector<8x2xf32>
    %141 = arith.addf %138, %140 : vector<8x2xf32>
    %142 = arith.negf %141 : vector<8x2xf32>
    %143 = math.exp %142 : vector<8x2xf32>
    %cst_95 = arith.constant 1.000000e+00 : f32
    %144 = vector.broadcast %cst_95 : f32 to vector<8x2xf32>
    %145 = arith.addf %144, %143 : vector<8x2xf32>
    %146 = arith.divf %144, %145 : vector<8x2xf32>
    %c0_96 = arith.constant 0 : index
    %c0_97 = arith.constant 0 : index
    %147 = vector.load %arg8[%c0_96, %c0_97] : memref<8x8xf32, #tpu.memory_space<vmem>>, vector<8x8xf32>
    %c0_98 = arith.constant 0 : index
    %c0_99 = arith.constant 0 : index
    %148 = vector.load %arg9[%c0_98, %c0_99] : memref<8x1xf32, #tpu.memory_space<vmem>>, vector<8x1xf32>
    %c0_100 = arith.constant 0 : index
    %c0_101 = arith.constant 0 : index
    %149 = vector.load %arg10[%c0_100, %c0_101] : memref<8x1xf32, #tpu.memory_space<vmem>>, vector<8x1xf32>
    %c0_102 = arith.constant 0 : index
    %c0_103 = arith.constant 0 : index
    %c0_104 = arith.constant 0 : index
    %150 = vector.load %arg12[%c0_102, %c0_103, %c0_104] : memref<2x8x256xf32, #tpu.memory_space<vmem>>, vector<1x8x256xf32>
    %151 = vector.shape_cast %150 : vector<1x8x256xf32> to vector<8x256xf32>
    %152 = vector.extract_strided_slice %146 {offsets = [0, 0], sizes = [8, 1], strides = [1, 1]} : vector<8x2xf32> to vector<8x1xf32>
    %153 = vector.broadcast %152 : vector<8x1xf32> to vector<8x256xf32>
    %154 = arith.mulf %151, %153 : vector<8x256xf32>
    %cst_105 = arith.constant dense<0.000000e+00> : vector<8x256xf32>
    %155 = tpu.matmul %147, %154, %cst_105 {dimension_numbers = #tpu.dot_dimension_numbers<[1], [0], [0], [1], [0, 0, 1, 1], [], []>} : vector<8x8xf32>, vector<8x256xf32>, vector<8x256xf32> -> vector<8x256xf32>
    %156 = vector.broadcast %148 : vector<8x1xf32> to vector<8x256xf32>
    %157 = arith.mulf %155, %156 : vector<8x256xf32>
    %158 = vector.broadcast %149 : vector<8x1xf32> to vector<8x256xf32>
    %159 = arith.addf %157, %158 : vector<8x256xf32>
    %c0_106 = arith.constant 0 : index
    %c0_107 = arith.constant 0 : index
    %c0_108 = arith.constant 0 : index
    %160 = vector.load %arg1[%c0_106, %c0_107, %c0_108] : memref<2x8x256xf32, #tpu.memory_space<vmem>>, vector<1x8x256xf32>
    %161 = vector.shape_cast %160 : vector<1x8x256xf32> to vector<8x256xf32>
    %162 = arith.addf %159, %161 : vector<8x256xf32>
    %c0_109 = arith.constant 0 : index
    %c0_110 = arith.constant 0 : index
    %c0_111 = arith.constant 0 : index
    %163 = vector.load %arg11[%c0_109, %c0_110, %c0_111] : memref<2x8x256xf32, #tpu.memory_space<vmem>>, vector<1x8x256xf32>
    %164 = vector.shape_cast %163 : vector<1x8x256xf32> to vector<8x256xf32>
    %165 = vector.shape_cast %162 : vector<8x256xf32> to vector<1x8x256xf32>
    tpu.vector_store %arg11[%c0_109, %c0_110, %c0_111], %165 {strides = array<i32>} : memref<2x8x256xf32, #tpu.memory_space<vmem>>, vector<1x8x256xf32>,
    %c1_112 = arith.constant 1 : index
    %c0_113 = arith.constant 0 : index
    %c0_114 = arith.constant 0 : index
    %166 = vector.load %arg12[%c1_112, %c0_113, %c0_114] : memref<2x8x256xf32, #tpu.memory_space<vmem>>, vector<1x8x256xf32>
    %167 = vector.shape_cast %166 : vector<1x8x256xf32> to vector<8x256xf32>
    %168 = vector.extract_strided_slice %146 {offsets = [0, 1], sizes = [8, 1], strides = [1, 1]} : vector<8x2xf32> to vector<8x1xf32>
    %169 = vector.broadcast %168 : vector<8x1xf32> to vector<8x256xf32>
    %170 = arith.mulf %167, %169 : vector<8x256xf32>
    %cst_115 = arith.constant dense<0.000000e+00> : vector<8x256xf32>
    %171 = tpu.matmul %147, %170, %cst_115 {dimension_numbers = #tpu.dot_dimension_numbers<[1], [0], [0], [1], [0, 0, 1, 1], [], []>} : vector<8x8xf32>, vector<8x256xf32>, vector<8x256xf32> -> vector<8x256xf32>
    %172 = vector.broadcast %148 : vector<8x1xf32> to vector<8x256xf32>
    %173 = arith.mulf %171, %172 : vector<8x256xf32>
    %174 = vector.broadcast %149 : vector<8x1xf32> to vector<8x256xf32>
    %175 = arith.addf %173, %174 : vector<8x256xf32>
    %c1_116 = arith.constant 1 : index
    %c0_117 = arith.constant 0 : index
    %c0_118 = arith.constant 0 : index
    %176 = vector.load %arg1[%c1_116, %c0_117, %c0_118] : memref<2x8x256xf32, #tpu.memory_space<vmem>>, vector<1x8x256xf32>
    %177 = vector.shape_cast %176 : vector<1x8x256xf32> to vector<8x256xf32>
    %178 = arith.addf %175, %177 : vector<8x256xf32>
    %c1_119 = arith.constant 1 : index
    %c0_120 = arith.constant 0 : index
    %c0_121 = arith.constant 0 : index
    %179 = vector.load %arg11[%c1_119, %c0_120, %c0_121] : memref<2x8x256xf32, #tpu.memory_space<vmem>>, vector<1x8x256xf32>
    %180 = vector.shape_cast %179 : vector<1x8x256xf32> to vector<8x256xf32>
    %181 = vector.shape_cast %178 : vector<8x256xf32> to vector<1x8x256xf32>
    tpu.vector_store %arg11[%c1_119, %c0_120, %c0_121], %181 {strides = array<i32>} : memref<2x8x256xf32, #tpu.memory_space<vmem>>, vector<1x8x256xf32>,
    return
  }
  func.func @transform_0(%arg0: i32) -> (i32, i32, i32) {
    %c0_i32 = arith.constant 0 : i32
    %c0_i32_0 = arith.constant 0 : i32
    %c0_i32_1 = arith.constant 0 : i32
    return %arg0, %c0_i32, %c0_i32_0 : i32, i32, i32
  }
  func.func @transform_1(%arg0: i32) -> (i32, i32, i32) {
    %c0_i32 = arith.constant 0 : i32
    %c0_i32_0 = arith.constant 0 : i32
    %c0_i32_1 = arith.constant 0 : i32
    %c0_i32_2 = arith.constant 0 : i32
    return %c0_i32, %c0_i32_0, %c0_i32_1 : i32, i32, i32
  }
  func.func @transform_2(%arg0: i32) -> (i32, i32) {
    %c0_i32 = arith.constant 0 : i32
    %c0_i32_0 = arith.constant 0 : i32
    %c0_i32_1 = arith.constant 0 : i32
    return %c0_i32, %c0_i32_0 : i32, i32
  }
  func.func @transform_3(%arg0: i32) -> (i32, i32) {
    %c0_i32 = arith.constant 0 : i32
    %c0_i32_0 = arith.constant 0 : i32
    %c0_i32_1 = arith.constant 0 : i32
    return %c0_i32, %c0_i32_0 : i32, i32
  }
  func.func @transform_4(%arg0: i32) -> (i32, i32) {
    %c0_i32 = arith.constant 0 : i32
    %c0_i32_0 = arith.constant 0 : i32
    %c0_i32_1 = arith.constant 0 : i32
    return %c0_i32, %c0_i32_0 : i32, i32
  }
  func.func @transform_5(%arg0: i32) -> (i32, i32) {
    %c0_i32 = arith.constant 0 : i32
    %c0_i32_0 = arith.constant 0 : i32
    %c0_i32_1 = arith.constant 0 : i32
    return %c0_i32, %c0_i32_0 : i32, i32
  }
  func.func @transform_6(%arg0: i32) -> (i32, i32) {
    %c0_i32 = arith.constant 0 : i32
    %c0_i32_0 = arith.constant 0 : i32
    %c0_i32_1 = arith.constant 0 : i32
    return %c0_i32, %c0_i32_0 : i32, i32
  }
  func.func @transform_7(%arg0: i32) -> (i32, i32) {
    %c0_i32 = arith.constant 0 : i32
    %c0_i32_0 = arith.constant 0 : i32
    %c0_i32_1 = arith.constant 0 : i32
    return %c0_i32, %c0_i32_0 : i32, i32
  }
  func.func @transform_8(%arg0: i32) -> (i32, i32) {
    %c0_i32 = arith.constant 0 : i32
    %c0_i32_0 = arith.constant 0 : i32
    %c0_i32_1 = arith.constant 0 : i32
    return %c0_i32, %c0_i32_0 : i32, i32
  }
  func.func @transform_9(%arg0: i32) -> (i32, i32) {
    %c0_i32 = arith.constant 0 : i32
    %c0_i32_0 = arith.constant 0 : i32
    %c0_i32_1 = arith.constant 0 : i32
    return %c0_i32, %c0_i32_0 : i32, i32
  }
  func.func @transform_10(%arg0: i32) -> (i32, i32, i32) {
    %c0_i32 = arith.constant 0 : i32
    %c0_i32_0 = arith.constant 0 : i32
    %c0_i32_1 = arith.constant 0 : i32
    return %arg0, %c0_i32, %c0_i32_0 : i32, i32, i32
  }
}

</mosaic_0001>

<bundles_post_ra>
// kernel: _lambda_.1
= control target key start
LH: loop header
LB: loop body
LE: loop exit
PB: predicated region body
PF: predicated region fallthrough
CT: control target
= control target key end

     0   :  { %s588_s17 = smov 16   ;;  %s589_s18 = smov 17   ;;  %v594_v4 = vmov 0   ;;  %v42_v27 = vlaneseq  ;;  %vm179_vm8 = vcmask 7168   ;;  %vm303_vm9 = vcmask 15368   ;;  %s945_s0 = inlined_call_operand.vmem [shape: f32[2,8,256], index: 0, kind: input, shape index: {}]   ;;  %s946_s2 = inlined_call_operand.vmem [shape: f32[8,1], index: 2, kind: input, shape index: {}]   ;;  %s947_s4 = inlined_call_operand.vmem [shape: f32[8,1], index: 4, kind: input, shape index: {}]   ;;  %s948_s6 = inlined_call_operand.vmem [shape: f32[8,1], index: 6, kind: input, shape index: {}]   ;;  %s949_s1 = inlined_call_operand.vmem [shape: f32[9,8,256], index: 1, kind: input, shape index: {}]   ;;  %s950_s3 = inlined_call_operand.vmem [shape: f32[8,8], index: 3, kind: input, shape index: {}]   ;;  %s951_s5 = inlined_call_operand.vmem [shape: f32[8,8], index: 5, kind: input, shape index: {}]   ;;  %s952_s8 = inlined_call_operand.vmem [shape: f32[8,1], index: 8, kind: input, shape index: {}]   ;;  %s953_s9 = inlined_call_operand.vmem [shape: f32[8,1], index: 9, kind: input, shape index: {}]   ;;  %s954_s7 = inlined_call_operand.vmem [shape: f32[8,8], index: 7, kind: input, shape index: {}]   ;;  %s955_s10 = inlined_call_operand.vmem [shape: f32[2,8,256], index: 10, kind: output, shape index: {}]  }
   0x1   :  { %v656_v0 = vld [vmem:[%s945_s0] sm:$0xff]  ;;  %v661_v1 = vld [vmem:[%s945_s0 + $0x10] sm:$0xff]  ;;  %v669_v2 = vld [vmem:[%s945_s0 + $0x8] sm:$0xff]  ;;  %s590_s23 = smov 15   ;;  %s591_s24 = smov 1   ;;  %580 = vset.pattern.permute.xlu2 %v594_v4  ;;  %vm313_vm10 = vcmask 64512  }
   0x2   :  { %51 = vrot.lane.b32.xlu1 %v656_v0, %s588_s17  ;;  %38 = vrot.lane.b32.xlu0 %v656_v0, %s589_s18  ;;  %v676_v3 = vld [vmem:[%s945_s0 + $0x18] sm:$0xff]  ;;  %s592_s0 = smov 127   ;;  %s593_s25 = smov 113   ;;  %v35_v5 = vld [vmem:[%s946_s2] sm:$0xff]  ;;  %v725_v28 = vand.u32 127, %v42_v27 }
   0x3   :  { %184 = vrot.lane.b32.xlu2 %v661_v1, %s589_s18  ;;  %s595_s26 = smov 112   ;;  %s596_s27 = smov 111   ;;  %v307_v6 = vld [vmem:[%s947_s4] sm:$0xff]  ;;  %v525_v32 = vld [vmem:[%s949_s1 + $0x10] sm:$0xff]  ;;  %v526_v35 = vld [vmem:[%s949_s1 + $0x18] sm:$0xff] }
   0x4   :  { %v339_v8 = vld [vmem:[%s948_s6] sm:$0xff]  ;;  %vm55_vm0 = vcmp.lt.s32.totalorder %v725_v28, 16  ;;  %vm44_vm1 = vcmp.lt.s32.totalorder %v725_v28, 17  ;;  %vm69_vm2 = vcmp.lt.s32.totalorder %v725_v28, 15  ;;  %vm83_vm3 = vcmp.lt.s32.totalorder %v725_v28, 1  ;;  %v191_v39 = vld [vmem:[%s949_s1 + $0x8] sm:$0xff] }
   0x5   :  { %v190_v38 = vld [vmem:[%s949_s1] sm:$0xff]  ;;  %v546_v43 = vld [vmem:[%s949_s1 + $0x28] sm:$0xff]  ;;  %v529_v48 = vld [vmem:[%s949_s1 + $0x30] sm:$0xff]  ;;  %vm104_vm4 = vcmp.lt.s32.totalorder %v725_v28, 127  ;;  %vm118_vm5 = vcmp.lt.s32.totalorder %v725_v28, 113  ;;  %vm132_vm6 = vcmp.lt.s32.totalorder %v725_v28, 112 }
   0x6   :  { %v545_v42 = vld [vmem:[%s949_s1 + $0x20] sm:$0xff]  ;;  %v530_v49 = vld [vmem:[%s949_s1 + $0x38] sm:$0xff]  ;;  %v784_v56 = vld [vmem:[%s949_s1 + $0x48] sm:$0xff]  ;;  %vm146_vm7 = vcmp.lt.s32.totalorder %v725_v28, 111 }
   0xa   :  { %53 = vrot.lane.b32.xlu1 %v669_v2, %s588_s17  ;;  %40 = vrot.lane.b32.xlu0 %v669_v2, %s589_s18 }
   0xb   :  { %186 = vrot.lane.b32.xlu2 %v676_v3, %s589_s18 }
  0x12   :  { %196 = vrot.lane.b32.xlu1 %v676_v3, %s588_s17  ;;  %194 = vrot.lane.b32.xlu0 %v661_v1, %s588_s17 }
  0x13   :  { %65 = vrot.lane.b32.xlu2 %v656_v0, %s590_s23 }
  0x1a   :  { %206 = vrot.lane.b32.xlu1 %v661_v1, %s590_s23  ;;  %67 = vrot.lane.b32.xlu0 %v669_v2, %s590_s23 }
  0x1b   :  { %208 = vrot.lane.b32.xlu2 %v676_v3, %s590_s23 }
  0x22   :  { %81 = vrot.lane.b32.xlu1 %v669_v2, %s591_s24  ;;  %79 = vrot.lane.b32.xlu0 %v656_v0, %s591_s24 }
  0x23   :  { %218 = vrot.lane.b32.xlu2 %v661_v1, %s591_s24 }
  0x2a   :  { %100 = vrot.lane.b32.xlu1 %v656_v0, %s592_s0  ;;  %220 = vrot.lane.b32.xlu0 %v676_v3, %s591_s24 }
  0x2b   :  { %102 = vrot.lane.b32.xlu2 %v669_v2, %s592_s0 }
  0x32   :  { %238 = vrot.lane.b32.xlu1 %v676_v3, %s592_s0  ;;  %236 = vrot.lane.b32.xlu0 %v661_v1, %s592_s0 }
  0x33   :  { %114 = vrot.lane.b32.xlu2 %v656_v0, %s593_s25 }
  0x3a   :  { %248 = vrot.lane.b32.xlu1 %v661_v1, %s593_s25  ;;  %116 = vrot.lane.b32.xlu0 %v669_v2, %s593_s25 }
  0x3b   :  { %250 = vrot.lane.b32.xlu2 %v676_v3, %s593_s25 }
  0x42   :  { %130 = vrot.lane.b32.xlu1 %v669_v2, %s595_s26  ;;  %128 = vrot.lane.b32.xlu0 %v656_v0, %s595_s26 }
  0x43   :  { %260 = vrot.lane.b32.xlu2 %v661_v1, %s595_s26 }
  0x4a   :  { %142 = vrot.lane.b32.xlu1 %v656_v0, %s596_s27  ;;  %262 = vrot.lane.b32.xlu0 %v676_v3, %s595_s26 }
  0x4b   :  { %144 = vrot.lane.b32.xlu2 %v669_v2, %s596_s27 }
  0x52   :  { %274 = vrot.lane.b32.xlu1 %v676_v3, %s596_s27  ;;  %272 = vrot.lane.b32.xlu0 %v661_v1, %s596_s27 }
  0x53   :  { %158 = vperm.xlu2 %580, %v35_v5  }
  0x5b   :  { %310 = vperm.xlu2 %580, %v307_v6  }
  0x5d   :  { %v185_v7 = vpop.permute.xlu2 %184 }
  0x63   :  { %342 = vperm.xlu2 %580, %v339_v8  }
  0x65   :  { %v187_v9 = vpop.permute.xlu2 %186 }
  0x66   :  { %v188_v52 = vsel %vm44_vm1, %v185_v7, %v187_v9  ;;  %v189_v53 = vsel %vm44_vm1, %v187_v9, %v185_v7 }
  0x67   :  { %v192_v7 = vmul.f32 %v190_v38, %v189_v53  ;;  %v193_v8 = vmul.f32 %v191_v39, %v188_v52 }
  0x6d   :  { %v66_v10 = vpop.permute.xlu2 %65 }
  0x74   :  { %v52_v11 = vpop.permute.xlu1 %51  ;;  %v39_v12 = vpop.permute.xlu0 %38 }
  0x75   :  { %v715_v13 = vpop.permute.xlu2 %208 }
  0x7c   :  { %v54_v14 = vpop.permute.xlu1 %53  ;;  %v41_v15 = vpop.permute.xlu0 %40 }
  0x7d   :  { %v717_v18 = vpop.permute.xlu2 %218  ;;  %v57_v33 = vsel %vm55_vm0, %v54_v14, %v52_v11  ;;  %v46_v34 = vsel %vm44_vm1, %v41_v15, %v39_v12  ;;  %v56_v36 = vsel %vm55_vm0, %v52_v11, %v54_v14  ;;  %v45_v37 = vsel %vm44_vm1, %v39_v12, %v41_v15 }
  0x7e   :  { %v61_v40 = vmul.f32 %v525_v32, %v57_v33  ;;  %v49_v41 = vmul.f32 %v190_v38, %v46_v34  ;;  %v62_v46 = vmul.f32 %v526_v35, %v56_v36  ;;  %v50_v47 = vmul.f32 %v191_v39, %v45_v37  ;;  %v553_v37 = vld [vmem:[%s949_s1 + $0x60] sm:$0xff]  ;;  %v554_v38 = vld [vmem:[%s949_s1 + $0x68] sm:$0xff] }
  0x7f   :  { %v97_v11 = vmul.f32 %v784_v56, %v669_v2 }
  0x80   :  { %v63_v59 = vadd.f32 %v61_v40, %v49_v41  ;;  %v64_v62 = vadd.f32 %v62_v46, %v50_v47  ;;  %v538_v46 = vld [vmem:[%s949_s1 + $0x78] sm:$0xff] }
  0x84   :  { %v197_v16 = vpop.permute.xlu1 %196  ;;  %v195_v17 = vpop.permute.xlu0 %194 }
  0x85   :  { %v719_v21 = vpop.permute.xlu2 %102  ;;  %v199_v60 = vsel %vm55_vm0, %v197_v16, %v195_v17  ;;  %v198_v63 = vsel %vm55_vm0, %v195_v17, %v197_v16 }
  0x86   :  { %v202_v12 = vmul.f32 %v525_v32, %v199_v60  ;;  %v203_v17 = vmul.f32 %v526_v35, %v198_v63 }
  0x88   :  { %v204_v41 = vadd.f32 %v202_v12, %v192_v7  ;;  %v539_v12 = vld [vmem:[%s949_s1 + $0x80] sm:$0xff] }
  0x8c   :  { %v207_v19 = vpop.permute.xlu1 %206  ;;  %v68_v20 = vpop.permute.xlu0 %67 }
  0x8d   :  { %v721_v24 = vpop.permute.xlu2 %114  ;;  %v70_v44 = vsel %vm69_vm2, %v66_v10, %v68_v20  ;;  %v71_v45 = vsel %vm69_vm2, %v68_v20, %v66_v10  ;;  %v211_v9 = vsel %vm69_vm2, %v715_v13, %v207_v19  ;;  %v531_v10 = vld [vmem:[%s949_s1 + $0x40] sm:$0xff]  ;;  %v210_v14 = vsel %vm69_vm2, %v207_v19, %v715_v13  ;;  %v533_v20 = vld [vmem:[%s949_s1 + $0x50] sm:$0xff] }
  0x8e   :  { %v75_v54 = vmul.f32 %v545_v42, %v71_v45  ;;  %v76_v55 = vmul.f32 %v546_v43, %v70_v44  ;;  %v214_v13 = vmul.f32 %v545_v42, %v211_v9  ;;  %v96_v33 = vmul.f32 %v531_v10, %v656_v0  ;;  %v537_v45 = vld [vmem:[%s949_s1 + $0x70] sm:$0xff] }
  0x8f   :  { %v215_v34 = vmul.f32 %v546_v43, %v210_v14  ;;  %v205_v42 = vadd.f32 %v203_v17, %v193_v8 }
  0x90   :  { %v77_v15 = vadd.f32 %v75_v54, %v63_v59  ;;  %v78_v16 = vadd.f32 %v76_v55, %v64_v62  ;;  %v216_v55 = vadd.f32 %v214_v13, %v204_v41 }
  0x94   :  { %v82_v22 = vpop.permute.xlu1 %81  ;;  %v80_v23 = vpop.permute.xlu0 %79 }
  0x95   :  { %v728_v29 = vpop.permute.xlu2 %250  ;;  %v84_v50 = vsel %vm83_vm3, %v80_v23, %v82_v22  ;;  %v85_v51 = vsel %vm83_vm3, %v82_v22, %v80_v23  ;;  %v534_v22 = vld [vmem:[%s949_s1 + $0x58] sm:$0xff] }
  0x96   :  { %v89_v5 = vmul.f32 %v529_v48, %v85_v51  ;;  %v90_v6 = vmul.f32 %v530_v49, %v84_v50 }
  0x98   :  { %v91_v19 = vadd.f32 %v89_v5, %v77_v15  ;;  %v92_v32 = vadd.f32 %v90_v6, %v78_v16  ;;  %v233_v6 = vmul.f32 %v676_v3, %v784_v56 }
  0x9a   :  { %v98_v43 = vadd.f32 %v96_v33, %v91_v19  ;;  %v99_v44 = vadd.f32 %v97_v11, %v92_v32 }
  0x9c   :  { %v101_v25 = vpop.permute.xlu1 %100  ;;  %v723_v26 = vpop.permute.xlu0 %220 }
  0x9d   :  { %v791_v61 = vpop.permute.xlu2 %260  ;;  %v105_v23 = vsel %vm104_vm4, %v101_v25, %v719_v21  ;;  %v106_v27 = vsel %vm104_vm4, %v719_v21, %v101_v25  ;;  %v222_v35 = vsel %vm83_vm3, %v717_v18, %v723_v26  ;;  %v223_v36 = vsel %vm83_vm3, %v723_v26, %v717_v18 }
  0x9e   :  { %v110_v21 = vmul.f32 %v533_v20, %v105_v23  ;;  %v111_v25 = vmul.f32 %v534_v22, %v106_v27  ;;  %v226_v50 = vmul.f32 %v529_v48, %v223_v36  ;;  %v227_v51 = vmul.f32 %v530_v49, %v222_v35 }
  0x9f   :  { %v232_v49 = vmul.f32 %v661_v1, %v531_v10 }
  0xa0   :  { %v112_v59 = vadd.f32 %v110_v21, %v98_v43  ;;  %v113_v60 = vadd.f32 %v111_v25, %v99_v44  ;;  %v228_v7 = vadd.f32 %v226_v50, %v216_v55 }
  0xa4   :  { %v730_v30 = vpop.permute.xlu1 %238  ;;  %v732_v31 = vpop.permute.xlu0 %236 }
  0xa5   :  { %v145_v54 = vpop.permute.xlu2 %144  ;;  %v240_v62 = vsel %vm104_vm4, %v732_v31, %v730_v30  ;;  %v241_v63 = vsel %vm104_vm4, %v730_v30, %v732_v31  ;;  %v540_v30 = vld [vmem:[%s949_s1 + $0x88] sm:$0xff] }
  0xa6   :  { %v244_v31 = vmul.f32 %v533_v20, %v240_v62  ;;  %v245_v14 = vmul.f32 %v534_v22, %v241_v63 }
  0xac   :  { %v786_v57 = vpop.permute.xlu1 %248  ;;  %v117_v58 = vpop.permute.xlu0 %116 }
  0xad   :  { %v119_v39 = vsel %vm118_vm5, %v721_v24, %v117_v58  ;;  %v120_v18 = vsel %vm118_vm5, %v117_v58, %v721_v24  ;;  %v217_v58 = vadd.f32 %v215_v34, %v205_v42  ;;  %v252_v56 = vsel %vm118_vm5, %v786_v57, %v728_v29 }
  0xae   :  { %v124_v52 = vmul.f32 %v553_v37, %v119_v39  ;;  %v125_v53 = vmul.f32 %v554_v38, %v120_v18  ;;  %v253_v10 = vsel %vm118_vm5, %v728_v29, %v786_v57  ;;  %v234_v57 = vadd.f32 %v232_v49, %v228_v7  ;;  %v159_v39 = vpop.permute.xlu2 %158 }
  0xaf   :  { %v229_v8 = vadd.f32 %v227_v51, %v217_v58  ;;  %v256_v33 = vmul.f32 %v553_v37, %v252_v56  ;;  %v257_v34 = vmul.f32 %v554_v38, %v253_v10 }
  0xb0   :  { %v126_v9 = vadd.f32 %v124_v52, %v112_v59  ;;  %v127_v11 = vadd.f32 %v125_v53, %v113_v60  ;;  %v246_v21 = vadd.f32 %v244_v31, %v234_v57  ;;  %v338_v57 = vld [vmem:[%s951_s5] sm:$0xff] }
  0xb1   :  { %v235_v32 = vadd.f32 %v233_v6, %v229_v8 }
  0xb2   :  { %v258_v42 = vadd.f32 %v256_v33, %v246_v21 }
  0xb3   :  { %v247_v25 = vadd.f32 %v245_v14, %v235_v32 }
  0xb4   :  { %v131_v26 = vpop.permute.xlu1 %130  ;;  %v129_v40 = vpop.permute.xlu0 %128 }
  0xb5   :  { %v133_v47 = vsel %vm132_vm6, %v129_v40, %v131_v26  ;;  %v134_v24 = vsel %vm132_vm6, %v131_v26, %v129_v40  ;;  %v259_v43 = vadd.f32 %v257_v34, %v247_v25  ;;  %v597_v34 = vmov 1  }
  0xb6   :  { %v138_v5 = vmul.f32 %v537_v45, %v133_v47  ;;  %v139_v48 = vmul.f32 %v538_v46, %v134_v24  ;;  %583 = vset.pattern.permute.xlu0 %v597_v34 }
  0xb8   :  { %v140_v17 = vadd.f32 %v138_v5, %v126_v9  ;;  %v141_v23 = vadd.f32 %v139_v48, %v127_v11 }
  0xbc   :  { %v143_v15 = vpop.permute.xlu1 %142  ;;  %v263_v16 = vpop.permute.xlu0 %262 }
  0xbd   :  { %v147_v27 = vsel %vm146_vm7, %v143_v15, %v145_v54  ;;  %v148_v20 = vsel %vm146_vm7, %v145_v54, %v143_v15  ;;  %v264_v19 = vsel %vm132_vm6, %v791_v61, %v263_v16  ;;  %v265_v29 = vsel %vm132_vm6, %v263_v16, %v791_v61 }
  0xbe   :  { %v152_v22 = vmul.f32 %v539_v12, %v147_v27  ;;  %v153_v13 = vmul.f32 %v540_v30, %v148_v20  ;;  %v268_v18 = vmul.f32 %v537_v45, %v264_v19  ;;  %v269_v26 = vmul.f32 %v538_v46, %v265_v29  ;;  %v305_v27 = vld [vmem:[%s950_s3] sm:$0xff] }
  0xc0   :  { %v154_v35 = vadd.f32 %v152_v22, %v140_v17  ;;  %v155_v36 = vadd.f32 %v153_v13, %v141_v23  ;;  %v270_v61 = vadd.f32 %v268_v18, %v258_v42  ;;  %v271_v51 = vadd.f32 %v269_v26, %v259_v43  ;;  %v311_v22 = vpop.permute.xlu2 %310 }
  0xc2   :  { %v161_v40 = vadd.f32 %v159_v39, %v154_v35  ;;  %v162_v41 = vadd.f32 %v159_v39, %v155_v36 }
  0xc4   :  { %v275_v44 = vpop.permute.xlu1 %274  ;;  %v273_v47 = vpop.permute.xlu0 %272  ;;  %v163_v24 = vadd.f32 3.0, %v161_v40  ;;  %v164_v50 = vadd.f32 3.0, %v162_v41 }
  0xc5   :  { %v276_v37 = vsel %vm146_vm7, %v273_v47, %v275_v44  ;;  %v277_v38 = vsel %vm146_vm7, %v275_v44, %v273_v47 }
  0xc6   :  { %v280_v52 = vmul.f32 %v539_v12, %v276_v37  ;;  %v281_v53 = vmul.f32 %v540_v30, %v277_v38  ;;  %v165_v45 = vmax.f32 %v163_v24, 0.0  ;;  %v166_v46 = vmax.f32 %v164_v50, 0.0  ;;  %v388_v50 = vld [vmem:[%s952_s8] sm:$0xff] }
  0xc8   :  { %v282_v54 = vadd.f32 %v280_v52, %v270_v61  ;;  %v283_v55 = vadd.f32 %v281_v53, %v271_v51  ;;  %v167_v58 = vmin.f32 %v165_v45, 6.0  ;;  %v168_v59 = vmin.f32 %v166_v46, 6.0  ;;  %v343_v32 = vpop.permute.xlu2 %342  ;;  %v389_v61 = vld [vmem:[%s953_s9] sm:$0xff] }
  0xc9   :  { %v387_v52 = vld [vmem:[%s954_s7] sm:$0xff] }
  0xca   :  { %v169_v60 = vmul.f32 %v167_v58, %v161_v40  ;;  %v170_v62 = vmul.f32 %v168_v59, %v162_v41  ;;  %v284_v63 = vadd.f32 %v282_v54, %v159_v39  ;;  %v285_v5 = vadd.f32 %v283_v55, %v159_v39 }
  0xcc   :  { %v891_v48 = vmul.f32 0.16666667, %v169_v60  ;;  %v893_v49 = vmul.f32 0.16666667, %v170_v62  ;;  %v286_v6 = vadd.f32 3.0, %v284_v63  ;;  %v287_v7 = vadd.f32 3.0, %v285_v5 }
  0xce   :  { %v175_v28 = vadd.f32 %v893_v49, %v891_v48  ;;  %v288_v8 = vmax.f32 %v286_v6, 0.0  ;;  %v289_v9 = vmax.f32 %v287_v7, 0.0 }
  0xd0   :  { %176 = vadd.xlane.f32.xlu0 %v175_v28  ;;  %v290_v11 = vmin.f32 %v288_v8, 6.0  ;;  %v291_v12 = vmin.f32 %v289_v9, 6.0 }
  0xd2   :  { %v292_v30 = vmul.f32 %v290_v11, %v284_v63  ;;  %v293_v31 = vmul.f32 %v291_v12, %v285_v5 }
  0xd4   :  { %v897_v14 = vmul.f32 0.16666667, %v292_v30  ;;  %v899_v56 = vmul.f32 0.16666667, %v293_v31 }
  0xd6   :  { %v299_v10 = vadd.f32 %v899_v56, %v897_v14 }
  0xd8   :  { %300 = vadd.xlane.f32.xlu1 %v299_v10 }
 0x143   :  { %v177_v15 = vpop.xlane.xlu0 %176 }
 0x144   :  { %v178_v16 = vmul.f32 0.00390625, %v177_v15 }
 0x146   :  { %180 = vst.msk [vmem:[#allocation3] sm:$0xff] %vm179_vm8, %v178_v16 }
 0x14b   :  { %v301_v17 = vpop.xlane.xlu1 %300 }
 0x14c   :  { %v302_v23 = vmul.f32 0.00390625, %v301_v17 }
 0x14e   :  { %304 = vst.msk [vmem:[#allocation3] sm:$0xff] %vm303_vm9, %v302_v23 }
 0x155   :  { %v306_v20 = vld [vmem:[#allocation3] sm:$0xff] }
 0x156   :  { %332 = vmatpush.msra.mxu0 %v306_v20 }
 0x157   :  { %559 = vmatmul.msk.f32.vlgmr.msra.gmra.mxu0 %vm313_vm10, %v305_v27 }
 0x1d4   :  { %v334_v13 = vpop.f32.mrf.mxu0 }
 0x1d5   :  { %v335_v19 = vadd.f32 %v334_v13, %v311_v22 }
 0x1d7   :  { %v337_v29 = vmax.f32 %v335_v19, 0.0 }
 0x1d9   :  { %363 = vmatpush.msra.mxu1 %v337_v29 }
 0x1da   :  { %560 = vmatmul.msk.f32.vlgmr.msra.gmra.mxu1 %vm313_vm10, %v338_v57 }
 0x257   :  { %v365_v33 = vpop.f32.mrf.mxu1 }
 0x258   :  { %v366_v35 = vadd.f32 %v365_v33, %v343_v32 }
 0x25a   :  { %v561_v36 = vmul.f32 -1.442695, %v366_v35 }
 0x25c   :  { %584 = vpow2.f32 %v561_v36 }
 0x262   :  { %v585_v21 = vpop.eup %584 }
 0x263   :  { %v371_v25 = vadd.f32 1.0, %v585_v21 }
 0x265   :  { %586 = vrcp.f32 %v371_v25  ;;  %v383_v40 = vand.u32 2147483648, %v371_v25  ;;  %v381_v42 = vand.u32 2147483647, %v371_v25  ;;  %vm377_vm12 = vweird.f32 %v371_v25 }
 0x267   :  { %v384_v44 = vor.u32 1.1754944e-38, %v383_v40  ;;  %vm382_vm14 = vcmp.eq.f32.partialorder %v381_v42, 8.507059e+37 }
 0x26b   :  { %v587_v39 = vpop.eup %586 }
 0x26c   :  { %v373_v18 = vmul.f32 %v587_v39, %v371_v25  ;;  %vm378_vm11 = vweird.f32 %v587_v39 }
 0x26d   :  { %vm379_vm13 = vmor %vm377_vm12, %vm378_vm11 }
 0x26e   :  { %v374_v26 = vsub.f32 1.0, %v373_v18 }
 0x270   :  { %v375_v41 = vmul.f32 %v587_v39, %v374_v26 }
 0x272   :  { %v376_v43 = vadd.f32 %v587_v39, %v375_v41 }
 0x274   :  { %v380_v47 = vsel %vm379_vm13, %v587_v39, %v376_v43 }
 0x275   :  { %v385_v24 = vsel %vm382_vm14, %v384_v44, %v380_v47 }
 0x276   :  { %394 = vperm.xlu2 %580, %v385_v24  }
 0x27e   :  { %581 = vset.pattern.permute.xlu2 %v597_v34 }
 0x27f   :  { %465 = vperm.xlu2 %581, %v385_v24  }
 0x287   :  { %582 = vset.pattern.permute.xlu2 %v594_v4 }
 0x288   :  { %444 = vperm.xlu2 %582, %v388_v50  }
 0x290   :  { %451 = vperm.xlu2 %582, %v389_v61  }
 0x2d0   :  { %v395_v51 = vpop.permute.xlu2 %394 }
 0x2d1   :  { %v397_v37 = vmul.f32 %v395_v51, %v891_v48  ;;  %v398_v38 = vmul.f32 %v395_v51, %v893_v49 }
 0x2d3   :  { %417 = vmatpush.msra.mxu2 %v397_v37  ;;  %437 = vmatpush.msra.mxu3 %v398_v38 }
 0x2d4   :  { %562 = vmatmul.msk.f32.vlgmr.msra.gmra.mxu2 %vm313_vm10, %v387_v52  ;;  %563 = vmatmul.msk.f32.vlgmr.msra.gmra.mxu3 %vm313_vm10, %v387_v52 }
 0x2d9   :  { %v466_v4 = vpop.permute.xlu2 %465 }
 0x2da   :  { %v468_v53 = vmul.f32 %v466_v4, %v897_v14  ;;  %v469_v45 = vmul.f32 %v466_v4, %v899_v56 }
 0x2dc   :  { %485 = vmatpush.msrb.mxu0 %v468_v53  ;;  %505 = vmatpush.msrb.mxu1 %v469_v45 }
 0x2dd   :  { %564 = vmatmul.msk.f32.vlgmr.msrb.gmra.mxu0 %vm313_vm10, %v387_v52  ;;  %565 = vmatmul.msk.f32.vlgmr.msrb.gmra.mxu1 %vm313_vm10, %v387_v52 }
 0x2e2   :  { %v445_v46 = vpop.permute.xlu2 %444 }
 0x2ea   :  { %v452_v60 = vpop.permute.xlu2 %451 }
 0x357   :  { %v419_v54 = vpop.f32.mrf.mxu2  ;;  %v439_v55 = vpop.f32.mrf.mxu3 }
 0x358   :  { %v447_v58 = vmul.f32 %v445_v46, %v419_v54  ;;  %v448_v59 = vmul.f32 %v445_v46, %v439_v55 }
 0x35a   :  { %v487_v62 = vpop.f32.mrf.mxu0  ;;  %v507_v63 = vpop.f32.mrf.mxu1  ;;  %v454_v5 = vadd.f32 %v452_v60, %v447_v58  ;;  %v455_v48 = vadd.f32 %v452_v60, %v448_v59 }
 0x35b   :  { %v510_v49 = vmul.f32 %v487_v62, %v445_v46  ;;  %v511_v6 = vmul.f32 %v507_v63, %v445_v46 }
 0x35c   :  { %v458_v7 = vadd.f32 %v454_v5, %v656_v0  ;;  %v459_v28 = vadd.f32 %v455_v48, %v669_v2 }
 0x35d   :  { %v512_v8 = vadd.f32 %v510_v49, %v452_v60  ;;  %v513_v9 = vadd.f32 %v511_v6, %v452_v60 }
 0x35e   :  { %460 = vst [vmem:[%s955_s10] sm:$0xff] %v458_v7 }
 0x35f   :  { %461 = vst [vmem:[%s955_s10 + $0x8] sm:$0xff] %v459_v28  ;;  %v516_v11 = vadd.f32 %v661_v1, %v512_v8  ;;  %v517_v12 = vadd.f32 %v676_v3, %v513_v9 }
 0x361   :  { %568 = vst [vmem:[%s955_s10 + $0x10] sm:$0xff] %v516_v11 }
 0x362   :  { %569 = vst [vmem:[%s955_s10 + $0x18] sm:$0xff] %v517_v12 }

</bundles_post_ra>
